<compile_context>
chip_gen: v7x
topology: tpu7x:2x2x1
jax: 0.10.0
libtpu: 0.0.40
codegen_flags: <defaults>
</compile_context>

<pallas_src>
import functools

import jax
import jax.numpy as jnp
from jax import lax
from jax.experimental import pallas as pl
from jax.experimental.pallas import tpu as pltpu

EPS = 1e-5
PAD = 128  # halo width: lane-aligned (multiple of 128) and > W + 1 (max tap shift)


def _resblock_kernel(x_ref, w1_ref, b1_ref, g1_ref, be1_ref,
                     w2_ref, b2_ref, g2_ref, be2_ref,
                     o_ref, pad_ref, *, N, C, H, W):
    """Fused ResBlock on an (N*C, H*W) sublane-packed, lane-dense layout.

    x_ref   : (N*C, H*W) f32          input (zero-copy reshape of NCHW)
    w*_ref  : (N*C, 9*N*C) f32        tap-flattened block-diagonal conv weights
    b*/g*/be*: (N*C, 1) f32           conv bias / BN gamma / BN beta (per row)
    o_ref   : (N*C, H*W) f32          output
    pad_ref : (N*C, 2*PAD + H*W) f32  VMEM scratch holding the padded conv source
    """
    NC, HW = o_ref.shape

    # Lane-position (w) masks: dx = +-1 taps must not read across an image row.
    wpos = lax.broadcasted_iota(jnp.int32, (1, HW), 1) % W
    mask_l = wpos >= 1        # valid lanes for dx = -1 taps
    mask_r = wpos <= W - 2    # valid lanes for dx = +1 taps

    # Zero the two 128-wide, lane-aligned halos exactly once (unmasked stores).
    # Invariant: halos stay zero for the whole kernel, so dy = +-1 taps stepping
    # past the top/bottom image rows read SAME zero padding; the interior is
    # fully overwritten before each conv, so nothing stale is ever read.
    pad_ref[:, :PAD] = jnp.zeros((NC, PAD), jnp.float32)
    pad_ref[:, PAD + HW:] = jnp.zeros((NC, PAD), jnp.float32)

    x = x_ref[...]                                   # (N*C, H*W), reused as skip

    def conv3x3(w_ref, b_ref):
        # Stack the 9 shifted (dx-masked) patches along sublanes and contract
        # them in ONE MXU dot against the tap-flattened block-diagonal weight.
        patches = []
        for tap in range(9):
            dy, dx = tap // 3 - 1, tap % 3 - 1
            off = PAD + dy * W + dx                  # static lane offset
            p = pad_ref[:, off:off + HW]             # (N*C, H*W)
            if dx == -1:
                p = jnp.where(mask_l, p, 0.0)
            elif dx == 1:
                p = jnp.where(mask_r, p, 0.0)
            patches.append(p)
        slab = jnp.concatenate(patches, axis=0)      # (9*N*C, H*W)
        y = jnp.dot(w_ref[...], slab,                # (N*C, H*W), K = 9*N*C
                    preferred_element_type=jnp.float32,
                    precision=lax.Precision.HIGHEST)
        return y + b_ref[...]                        # (N*C, 1) lane-broadcast

    def sum_over_images(s):
        # s: (N*C, 1) per-row partial sums.  Rows are n*C + c; return the
        # per-channel total broadcast back onto every row.  Implemented as a
        # slice+concat sublane rotation (pure jnp, trivially cheap here).
        tot = s
        for k in range(1, N):
            sh = k * C
            tot = tot + jnp.concatenate([s[sh:, :], s[:sh, :]], axis=0)
        return tot

    def batchnorm(y, g_ref, be_ref):
        # Training-mode BN (biased variance), fused single-pass statistics:
        # var = E[x^2] - mean^2 (fine at f32 for these magnitudes).
        inv_cnt = 1.0 / float(N * HW)
        mean = sum_over_images(jnp.sum(y, axis=1, keepdims=True)) * inv_cnt
        ex2 = sum_over_images(jnp.sum(y * y, axis=1, keepdims=True)) * inv_cnt
        var = ex2 - mean * mean
        return (y - mean) * (lax.rsqrt(var + EPS) * g_ref[...]) + be_ref[...]

    # conv1 -> BN1 -> ReLU (interior store is a full, lane-aligned slab).
    pad_ref[:, PAD:PAD + HW] = x
    h1 = jnp.maximum(batchnorm(conv3x3(w1_ref, b1_ref), g1_ref, be1_ref), 0.0)

    # conv2 -> BN2 -> +skip -> ReLU (lane-dense full-tile output store).
    pad_ref[:, PAD:PAD + HW] = h1
    h2 = batchnorm(conv3x3(w2_ref, b2_ref), g2_ref, be2_ref)
    o_ref[...] = jnp.maximum(h2 + x, 0.0)


def resblock_forward(x_nchw, params):
    """PyTorch-compatible wrapper: NCHW in/out, OIHW conv weights, (C,) vectors."""
    w1, b1, g1, be1, w2, b2, g2, be2 = params
    N, C, H, W = x_nchw.shape
    HW, NC = H * W, N * C

    # Zero-copy activation layout: NCHW -> (N*C, H*W). No transpose/pad HLOs.
    xf = x_nchw.reshape(NC, HW).astype(jnp.float32)

    def block_weight(w_oihw):
        # OIHW -> (tap, Cout, Cin) -> per-image block-diagonal, tap-flattened:
        # Wblk[n*C+co, tap*NC + n*C+ci] = w[co, ci, ky, kx], tap = ky*3 + kx.
        w_t = jnp.transpose(w_oihw.astype(jnp.float32), (2, 3, 0, 1)).reshape(9, C, C)
        eye = jnp.eye(N, dtype=jnp.float32)
        return jnp.concatenate([jnp.kron(eye, w_t[t]) for t in range(9)], axis=1)

    def per_row(v):  # (C,) -> (N*C, 1): row n*C + c maps to v[c]
        return jnp.tile(v.astype(jnp.float32), N).reshape(NC, 1)

    wb1, wb2 = block_weight(w1), block_weight(w2)
    b1v, g1v, be1v = per_row(b1), per_row(g1), per_row(be1)
    b2v, g2v, be2v = per_row(b2), per_row(g2), per_row(be2)

    kernel = functools.partial(_resblock_kernel, N=N, C=C, H=H, W=W)
    # TODO(synk): for activations that do not fit in VMEM (or to use both v7x
    # TensorCores), add a grid over batch/spatial tiles with a two-pass BN
    # (per-tile partial sums over an 'arbitrary' axis, then normalize + ReLU)
    # and dimension_semantics=("parallel", ...); at this tiny size a grid is
    # pure overhead, so the kernel stays gridless.
    out_flat = pl.pallas_call(
        kernel,
        out_shape=jax.ShapeDtypeStruct((NC, HW), jnp.float32),
        in_specs=[pl.BlockSpec(memory_space=pltpu.MemorySpace.VMEM)] * 9,
        out_specs=pl.BlockSpec(memory_space=pltpu.MemorySpace.VMEM),
        scratch_shapes=[pltpu.VMEM((NC, HW + 2 * PAD), jnp.float32)],
    )(xf, wb1, b1v, g1v, be1v, wb2, b2v, g2v, be2v)

    return out_flat.reshape(N, C, H, W)


def ref_forward(x_nchw, params):
    """Pure-JAX reference (same math as the PyTorch module in training mode)."""
    w1, b1, g1, be1, w2, b2, g2, be2 = params
    x = jnp.transpose(x_nchw, (0, 2, 3, 1)).astype(jnp.float32)

    def conv(v, w_oihw, b):
        w = jnp.transpose(w_oihw.astype(jnp.float32), (2, 3, 1, 0))   # OIHW -> HWIO
        y = lax.conv_general_dilated(v, w, (1, 1), "SAME",
                                     dimension_numbers=("NHWC", "HWIO", "NHWC"),
                                     precision=lax.Precision.HIGHEST)
        return y + b.reshape(1, 1, 1, -1)

    def bn(y, g, be):
        m = jnp.mean(y, axis=(0, 1, 2), keepdims=True)
        v = jnp.mean((y - m) ** 2, axis=(0, 1, 2), keepdims=True)
        return (y - m) / jnp.sqrt(v + EPS) * g.reshape(1, 1, 1, -1) + be.reshape(1, 1, 1, -1)

    h = jax.nn.relu(bn(conv(x, w1, b1), g1, be1))
    h = bn(conv(h, w2, b2), g2, be2)
    return jnp.transpose(jax.nn.relu(h + x), (0, 3, 1, 2))


if __name__ == "__main__":
    N, C, H, W = 2, 4, 16, 16
    key = jax.random.PRNGKey(0)
    ks = jax.random.split(key, 9)

    x_nchw = jax.random.normal(ks[0], (N, C, H, W), jnp.float32)

    # Synthetic parameters with nn.Conv2d / nn.BatchNorm2d shapes (PyTorch OIHW).
    w1 = 0.1 * jax.random.normal(ks[1], (C, C, 3, 3), jnp.float32)
    b1 = 0.1 * jax.random.normal(ks[2], (C,), jnp.float32)
    g1 = 1.0 + 0.1 * jax.random.normal(ks[3], (C,), jnp.float32)
    be1 = 0.1 * jax.random.normal(ks[4], (C,), jnp.float32)
    w2 = 0.1 * jax.random.normal(ks[5], (C, C, 3, 3), jnp.float32)
    b2 = 0.1 * jax.random.normal(ks[6], (C,), jnp.float32)
    g2 = 1.0 + 0.1 * jax.random.normal(ks[7], (C,), jnp.float32)
    be2 = 0.1 * jax.random.normal(ks[8], (C,), jnp.float32)
    params = (w1, b1, g1, be1, w2, b2, g2, be2)

    out = jax.block_until_ready(resblock_forward(x_nchw, params))
    ref = jax.block_until_ready(ref_forward(x_nchw, params))

    assert out.shape == (N, C, H, W)
    max_err = float(jnp.max(jnp.abs(out - ref)))
    assert max_err < 1e-3, f"max_err={max_err}"
    print("KERNEL_OK")
</pallas_src>

<mosaic_0001>
module attributes {stable_mosaic.version = 11 : i64} {
  func.func @_resblock_kernel(%arg0: memref<8x256xf32, #tpu.memory_space<vmem>>, %arg1: memref<8x72xf32, #tpu.memory_space<vmem>>, %arg2: memref<8x1xf32, #tpu.memory_space<vmem>>, %arg3: memref<8x1xf32, #tpu.memory_space<vmem>>, %arg4: memref<8x1xf32, #tpu.memory_space<vmem>>, %arg5: memref<8x72xf32, #tpu.memory_space<vmem>>, %arg6: memref<8x1xf32, #tpu.memory_space<vmem>>, %arg7: memref<8x1xf32, #tpu.memory_space<vmem>>, %arg8: memref<8x1xf32, #tpu.memory_space<vmem>>, %arg9: memref<8x256xf32, #tpu.memory_space<vmem>>, %arg10: memref<8x512xf32, #tpu.memory_space<vmem>>) attributes {dimension_semantics = [], scalar_prefetch = 0 : i64, scratch_operands = 1 : i64, tpu.core_type = #tpu.core_type<tc>} {
    %0 = tpu.iota {dimensions = array<i32: 1>} : vector<1x256xi32>
    %c16_i32 = arith.constant 16 : i32
    %c0_i32 = arith.constant 0 : i32
    %1 = arith.cmpi eq, %c16_i32, %c0_i32 : i32
    %c1_i32 = arith.constant 1 : i32
    %2 = arith.select %1, %c1_i32, %c16_i32 : i32
    %3 = vector.broadcast %2 : i32 to vector<1x256xi32>
    %4 = arith.remsi %0, %3 : vector<1x256xi32>
    %c0_i32_0 = arith.constant 0 : i32
    %5 = vector.broadcast %c0_i32_0 : i32 to vector<1x256xi32>
    %6 = arith.cmpi ne, %4, %5 : vector<1x256xi32>
    %c0_i32_1 = arith.constant 0 : i32
    %7 = vector.broadcast %c0_i32_1 : i32 to vector<1x256xi32>
    %8 = arith.cmpi slt, %4, %7 : vector<1x256xi32>
    %c0_i32_2 = arith.constant 0 : i32
    %9 = arith.cmpi slt, %2, %c0_i32_2 : i32
    %10 = vector.broadcast %9 : i1 to vector<1x256xi1>
    %11 = vector.broadcast %10 : vector<1x256xi1> to vector<1x256xi1>
    %12 = arith.xori %8, %11 : vector<1x256xi1>
    %13 = arith.andi %12, %6 : vector<1x256xi1>
    %14 = vector.broadcast %2 : i32 to vector<1x256xi32>
    %15 = arith.addi %4, %14 : vector<1x256xi32>
    %16 = arith.select %13, %15, %4 : vector<1x256xi1>, vector<1x256xi32>
    %c1_i32_3 = arith.constant 1 : i32
    %17 = vector.broadcast %c1_i32_3 : i32 to vector<1x256xi32>
    %18 = arith.cmpi sge, %16, %17 : vector<1x256xi32>
    %c14_i32 = arith.constant 14 : i32
    %19 = vector.broadcast %c14_i32 : i32 to vector<1x256xi32>
    %20 = arith.cmpi sle, %16, %19 : vector<1x256xi32>
    %cst = arith.constant 0.000000e+00 : f32
    %21 = vector.broadcast %cst : f32 to vector<8x128xf32>
    %c0 = arith.constant 0 : index
    %c0_4 = arith.constant 0 : index
    %22 = vector.load %arg10[%c0, %c0_4] : memref<8x512xf32, #tpu.memory_space<vmem>>, vector<8x128xf32>
    tpu.vector_store %arg10[%c0, %c0_4], %21 {strides = array<i32>} : memref<8x512xf32, #tpu.memory_space<vmem>>, vector<8x128xf32>,
    %cst_5 = arith.constant 0.000000e+00 : f32
    %23 = vector.broadcast %cst_5 : f32 to vector<8x128xf32>
    %c0_6 = arith.constant 0 : index
    %c384 = arith.constant 384 : index
    %24 = vector.load %arg10[%c0_6, %c384] : memref<8x512xf32, #tpu.memory_space<vmem>>, vector<8x128xf32>
    tpu.vector_store %arg10[%c0_6, %c384], %23 {strides = array<i32>} : memref<8x512xf32, #tpu.memory_space<vmem>>, vector<8x128xf32>,
    %c0_7 = arith.constant 0 : index
    %c0_8 = arith.constant 0 : index
    %25 = vector.load %arg0[%c0_7, %c0_8] : memref<8x256xf32, #tpu.memory_space<vmem>>, vector<8x256xf32>
    %c0_9 = arith.constant 0 : index
    %c128 = arith.constant 128 : index
    %26 = vector.load %arg10[%c0_9, %c128] : memref<8x512xf32, #tpu.memory_space<vmem>>, vector<8x256xf32>
    tpu.vector_store %arg10[%c0_9, %c128], %25 {strides = array<i32>} : memref<8x512xf32, #tpu.memory_space<vmem>>, vector<8x256xf32>,
    %c0_10 = arith.constant 0 : index
    %c111 = arith.constant 111 : index
    %27 = vector.load %arg10[%c0_10, %c111] : memref<8x512xf32, #tpu.memory_space<vmem>>, vector<8x256xf32>
    %cst_11 = arith.constant 0.000000e+00 : f32
    %28 = vector.shape_cast %18 : vector<1x256xi1> to vector<1x256xi1>
    %29 = vector.broadcast %28 : vector<1x256xi1> to vector<8x256xi1>
    %30 = vector.broadcast %cst_11 : f32 to vector<8x256xf32>
    %31 = arith.select %29, %27, %30 : vector<8x256xi1>, vector<8x256xf32>
    %c0_12 = arith.constant 0 : index
    %c112 = arith.constant 112 : index
    %32 = vector.load %arg10[%c0_12, %c112] : memref<8x512xf32, #tpu.memory_space<vmem>>, vector<8x256xf32>
    %c0_13 = arith.constant 0 : index
    %c113 = arith.constant 113 : index
    %33 = vector.load %arg10[%c0_13, %c113] : memref<8x512xf32, #tpu.memory_space<vmem>>, vector<8x256xf32>
    %cst_14 = arith.constant 0.000000e+00 : f32
    %34 = vector.shape_cast %20 : vector<1x256xi1> to vector<1x256xi1>
    %35 = vector.broadcast %34 : vector<1x256xi1> to vector<8x256xi1>
    %36 = vector.broadcast %cst_14 : f32 to vector<8x256xf32>
    %37 = arith.select %35, %33, %36 : vector<8x256xi1>, vector<8x256xf32>
    %c0_15 = arith.constant 0 : index
    %c127 = arith.constant 127 : index
    %38 = vector.load %arg10[%c0_15, %c127] : memref<8x512xf32, #tpu.memory_space<vmem>>, vector<8x256xf32>
    %cst_16 = arith.constant 0.000000e+00 : f32
    %39 = vector.shape_cast %18 : vector<1x256xi1> to vector<1x256xi1>
    %40 = vector.broadcast %39 : vector<1x256xi1> to vector<8x256xi1>
    %41 = vector.broadcast %cst_16 : f32 to vector<8x256xf32>
    %42 = arith.select %40, %38, %41 : vector<8x256xi1>, vector<8x256xf32>
    %c0_17 = arith.constant 0 : index
    %c128_18 = arith.constant 128 : index
    %43 = vector.load %arg10[%c0_17, %c128_18] : memref<8x512xf32, #tpu.memory_space<vmem>>, vector<8x256xf32>
    %c0_19 = arith.constant 0 : index
    %c129 = arith.constant 129 : index
    %44 = vector.load %arg10[%c0_19, %c129] : memref<8x512xf32, #tpu.memory_space<vmem>>, vector<8x256xf32>
    %cst_20 = arith.constant 0.000000e+00 : f32
    %45 = vector.shape_cast %20 : vector<1x256xi1> to vector<1x256xi1>
    %46 = vector.broadcast %45 : vector<1x256xi1> to vector<8x256xi1>
    %47 = vector.broadcast %cst_20 : f32 to vector<8x256xf32>
    %48 = arith.select %46, %44, %47 : vector<8x256xi1>, vector<8x256xf32>
    %c0_21 = arith.constant 0 : index
    %c143 = arith.constant 143 : index
    %49 = vector.load %arg10[%c0_21, %c143] : memref<8x512xf32, #tpu.memory_space<vmem>>, vector<8x256xf32>
    %cst_22 = arith.constant 0.000000e+00 : f32
    %50 = vector.shape_cast %18 : vector<1x256xi1> to vector<1x256xi1>
    %51 = vector.broadcast %50 : vector<1x256xi1> to vector<8x256xi1>
    %52 = vector.broadcast %cst_22 : f32 to vector<8x256xf32>
    %53 = arith.select %51, %49, %52 : vector<8x256xi1>, vector<8x256xf32>
    %c0_23 = arith.constant 0 : index
    %c144 = arith.constant 144 : index
    %54 = vector.load %arg10[%c0_23, %c144] : memref<8x512xf32, #tpu.memory_space<vmem>>, vector<8x256xf32>
    %c0_24 = arith.constant 0 : index
    %c145 = arith.constant 145 : index
    %55 = vector.load %arg10[%c0_24, %c145] : memref<8x512xf32, #tpu.memory_space<vmem>>, vector<8x256xf32>
    %cst_25 = arith.constant 0.000000e+00 : f32
    %56 = vector.shape_cast %20 : vector<1x256xi1> to vector<1x256xi1>
    %57 = vector.broadcast %56 : vector<1x256xi1> to vector<8x256xi1>
    %58 = vector.broadcast %cst_25 : f32 to vector<8x256xf32>
    %59 = arith.select %57, %55, %58 : vector<8x256xi1>, vector<8x256xf32>
    %60 = tpu.concatenate %31, %32, %37, %42, %43, %48, %53, %54, %59 in 0 : vector<8x256xf32>, vector<8x256xf32>, vector<8x256xf32>, vector<8x256xf32>, vector<8x256xf32>, vector<8x256xf32>, vector<8x256xf32>, vector<8x256xf32>, vector<8x256xf32> -> vector<72x256xf32>
    %c0_26 = arith.constant 0 : index
    %c0_27 = arith.constant 0 : index
    %61 = vector.load %arg1[%c0_26, %c0_27] : memref<8x72xf32, #tpu.memory_space<vmem>>, vector<8x72xf32>
    %cst_28 = arith.constant dense<0.000000e+00> : vector<8x256xf32>
    %62 = tpu.matmul %61, %60, %cst_28 {dimension_numbers = #tpu.dot_dimension_numbers<[1], [0], [0], [1], [0, 0, 1, 1], [], []>, precision = #tpu.contract_precision<fp32>} : vector<8x72xf32>, vector<72x256xf32>, vector<8x256xf32> -> vector<8x256xf32>
    %c0_29 = arith.constant 0 : index
    %c0_30 = arith.constant 0 : index
    %63 = vector.load %arg2[%c0_29, %c0_30] : memref<8x1xf32, #tpu.memory_space<vmem>>, vector<8x1xf32>
    %64 = vector.broadcast %63 : vector<8x1xf32> to vector<8x256xf32>
    %65 = arith.addf %62, %64 : vector<8x256xf32>
    %cst_31 = arith.constant dense<0.000000e+00> : vector<8xf32>
    %66 = vector.multi_reduction <add>, %65, %cst_31 [1] : vector<8x256xf32> to vector<8xf32>
    %67 = vector.shape_cast %66 : vector<8xf32> to vector<8x1xf32>
    %68 = vector.extract_strided_slice %67 {offsets = [4, 0], sizes = [4, 1], strides = [1, 1]} : vector<8x1xf32> to vector<4x1xf32>
    %69 = vector.extract_strided_slice %67 {offsets = [0, 0], sizes = [4, 1], strides = [1, 1]} : vector<8x1xf32> to vector<4x1xf32>
    %70 = tpu.concatenate %68, %69 in 0 : vector<4x1xf32>, vector<4x1xf32> -> vector<8x1xf32>
    %71 = arith.addf %67, %70 : vector<8x1xf32>
    %cst_32 = arith.constant 0.001953125 : f32
    %72 = vector.broadcast %cst_32 : f32 to vector<8x1xf32>
    %73 = arith.mulf %71, %72 : vector<8x1xf32>
    %74 = arith.mulf %65, %65 : vector<8x256xf32>
    %cst_33 = arith.constant dense<0.000000e+00> : vector<8xf32>
    %75 = vector.multi_reduction <add>, %74, %cst_33 [1] : vector<8x256xf32> to vector<8xf32>
    %76 = vector.shape_cast %75 : vector<8xf32> to vector<8x1xf32>
    %77 = vector.extract_strided_slice %76 {offsets = [4, 0], sizes = [4, 1], strides = [1, 1]} : vector<8x1xf32> to vector<4x1xf32>
    %78 = vector.extract_strided_slice %76 {offsets = [0, 0], sizes = [4, 1], strides = [1, 1]} : vector<8x1xf32> to vector<4x1xf32>
    %79 = tpu.concatenate %77, %78 in 0 : vector<4x1xf32>, vector<4x1xf32> -> vector<8x1xf32>
    %80 = arith.addf %76, %79 : vector<8x1xf32>
    %cst_34 = arith.constant 0.001953125 : f32
    %81 = vector.broadcast %cst_34 : f32 to vector<8x1xf32>
    %82 = arith.mulf %80, %81 : vector<8x1xf32>
    %83 = arith.mulf %73, %73 : vector<8x1xf32>
    %84 = arith.subf %82, %83 : vector<8x1xf32>
    %85 = vector.broadcast %73 : vector<8x1xf32> to vector<8x256xf32>
    %86 = arith.subf %65, %85 : vector<8x256xf32>
    %cst_35 = arith.constant 9.99999974E-6 : f32
    %87 = vector.broadcast %cst_35 : f32 to vector<8x1xf32>
    %88 = arith.addf %84, %87 : vector<8x1xf32>
    %89 = math.rsqrt %88 : vector<8x1xf32>
    %c0_36 = arith.constant 0 : index
    %c0_37 = arith.constant 0 : index
    %90 = vector.load %arg3[%c0_36, %c0_37] : memref<8x1xf32, #tpu.memory_space<vmem>>, vector<8x1xf32>
    %91 = arith.mulf %89, %90 : vector<8x1xf32>
    %92 = vector.broadcast %91 : vector<8x1xf32> to vector<8x256xf32>
    %93 = arith.mulf %86, %92 : vector<8x256xf32>
    %c0_38 = arith.constant 0 : index
    %c0_39 = arith.constant 0 : index
    %94 = vector.load %arg4[%c0_38, %c0_39] : memref<8x1xf32, #tpu.memory_space<vmem>>, vector<8x1xf32>
    %95 = vector.broadcast %94 : vector<8x1xf32> to vector<8x256xf32>
    %96 = arith.addf %93, %95 : vector<8x256xf32>
    %cst_40 = arith.constant 0.000000e+00 : f32
    %97 = vector.broadcast %cst_40 : f32 to vector<8x256xf32>
    %98 = arith.maximumf %96, %97 : vector<8x256xf32>
    %c0_41 = arith.constant 0 : index
    %c128_42 = arith.constant 128 : index
    %99 = vector.load %arg10[%c0_41, %c128_42] : memref<8x512xf32, #tpu.memory_space<vmem>>, vector<8x256xf32>
    tpu.vector_store %arg10[%c0_41, %c128_42], %98 {strides = array<i32>} : memref<8x512xf32, #tpu.memory_space<vmem>>, vector<8x256xf32>,
    %c0_43 = arith.constant 0 : index
    %c111_44 = arith.constant 111 : index
    %100 = vector.load %arg10[%c0_43, %c111_44] : memref<8x512xf32, #tpu.memory_space<vmem>>, vector<8x256xf32>
    %cst_45 = arith.constant 0.000000e+00 : f32
    %101 = vector.shape_cast %18 : vector<1x256xi1> to vector<1x256xi1>
    %102 = vector.broadcast %101 : vector<1x256xi1> to vector<8x256xi1>
    %103 = vector.broadcast %cst_45 : f32 to vector<8x256xf32>
    %104 = arith.select %102, %100, %103 : vector<8x256xi1>, vector<8x256xf32>
    %c0_46 = arith.constant 0 : index
    %c112_47 = arith.constant 112 : index
    %105 = vector.load %arg10[%c0_46, %c112_47] : memref<8x512xf32, #tpu.memory_space<vmem>>, vector<8x256xf32>
    %c0_48 = arith.constant 0 : index
    %c113_49 = arith.constant 113 : index
    %106 = vector.load %arg10[%c0_48, %c113_49] : memref<8x512xf32, #tpu.memory_space<vmem>>, vector<8x256xf32>
    %cst_50 = arith.constant 0.000000e+00 : f32
    %107 = vector.shape_cast %20 : vector<1x256xi1> to vector<1x256xi1>
    %108 = vector.broadcast %107 : vector<1x256xi1> to vector<8x256xi1>
    %109 = vector.broadcast %cst_50 : f32 to vector<8x256xf32>
    %110 = arith.select %108, %106, %109 : vector<8x256xi1>, vector<8x256xf32>
    %c0_51 = arith.constant 0 : index
    %c127_52 = arith.constant 127 : index
    %111 = vector.load %arg10[%c0_51, %c127_52] : memref<8x512xf32, #tpu.memory_space<vmem>>, vector<8x256xf32>
    %cst_53 = arith.constant 0.000000e+00 : f32
    %112 = vector.shape_cast %18 : vector<1x256xi1> to vector<1x256xi1>
    %113 = vector.broadcast %112 : vector<1x256xi1> to vector<8x256xi1>
    %114 = vector.broadcast %cst_53 : f32 to vector<8x256xf32>
    %115 = arith.select %113, %111, %114 : vector<8x256xi1>, vector<8x256xf32>
    %c0_54 = arith.constant 0 : index
    %c128_55 = arith.constant 128 : index
    %116 = vector.load %arg10[%c0_54, %c128_55] : memref<8x512xf32, #tpu.memory_space<vmem>>, vector<8x256xf32>
    %c0_56 = arith.constant 0 : index
    %c129_57 = arith.constant 129 : index
    %117 = vector.load %arg10[%c0_56, %c129_57] : memref<8x512xf32, #tpu.memory_space<vmem>>, vector<8x256xf32>
    %cst_58 = arith.constant 0.000000e+00 : f32
    %118 = vector.shape_cast %20 : vector<1x256xi1> to vector<1x256xi1>
    %119 = vector.broadcast %118 : vector<1x256xi1> to vector<8x256xi1>
    %120 = vector.broadcast %cst_58 : f32 to vector<8x256xf32>
    %121 = arith.select %119, %117, %120 : vector<8x256xi1>, vector<8x256xf32>
    %c0_59 = arith.constant 0 : index
    %c143_60 = arith.constant 143 : index
    %122 = vector.load %arg10[%c0_59, %c143_60] : memref<8x512xf32, #tpu.memory_space<vmem>>, vector<8x256xf32>
    %cst_61 = arith.constant 0.000000e+00 : f32
    %123 = vector.shape_cast %18 : vector<1x256xi1> to vector<1x256xi1>
    %124 = vector.broadcast %123 : vector<1x256xi1> to vector<8x256xi1>
    %125 = vector.broadcast %cst_61 : f32 to vector<8x256xf32>
    %126 = arith.select %124, %122, %125 : vector<8x256xi1>, vector<8x256xf32>
    %c0_62 = arith.constant 0 : index
    %c144_63 = arith.constant 144 : index
    %127 = vector.load %arg10[%c0_62, %c144_63] : memref<8x512xf32, #tpu.memory_space<vmem>>, vector<8x256xf32>
    %c0_64 = arith.constant 0 : index
    %c145_65 = arith.constant 145 : index
    %128 = vector.load %arg10[%c0_64, %c145_65] : memref<8x512xf32, #tpu.memory_space<vmem>>, vector<8x256xf32>
    %cst_66 = arith.constant 0.000000e+00 : f32
    %129 = vector.shape_cast %20 : vector<1x256xi1> to vector<1x256xi1>
    %130 = vector.broadcast %129 : vector<1x256xi1> to vector<8x256xi1>
    %131 = vector.broadcast %cst_66 : f32 to vector<8x256xf32>
    %132 = arith.select %130, %128, %131 : vector<8x256xi1>, vector<8x256xf32>
    %133 = tpu.concatenate %104, %105, %110, %115, %116, %121, %126, %127, %132 in 0 : vector<8x256xf32>, vector<8x256xf32>, vector<8x256xf32>, vector<8x256xf32>, vector<8x256xf32>, vector<8x256xf32>, vector<8x256xf32>, vector<8x256xf32>, vector<8x256xf32> -> vector<72x256xf32>
    %c0_67 = arith.constant 0 : index
    %c0_68 = arith.constant 0 : index
    %134 = vector.load %arg5[%c0_67, %c0_68] : memref<8x72xf32, #tpu.memory_space<vmem>>, vector<8x72xf32>
    %cst_69 = arith.constant dense<0.000000e+00> : vector<8x256xf32>
    %135 = tpu.matmul %134, %133, %cst_69 {dimension_numbers = #tpu.dot_dimension_numbers<[1], [0], [0], [1], [0, 0, 1, 1], [], []>, precision = #tpu.contract_precision<fp32>} : vector<8x72xf32>, vector<72x256xf32>, vector<8x256xf32> -> vector<8x256xf32>
    %c0_70 = arith.constant 0 : index
    %c0_71 = arith.constant 0 : index
    %136 = vector.load %arg6[%c0_70, %c0_71] : memref<8x1xf32, #tpu.memory_space<vmem>>, vector<8x1xf32>
    %137 = vector.broadcast %136 : vector<8x1xf32> to vector<8x256xf32>
    %138 = arith.addf %135, %137 : vector<8x256xf32>
    %cst_72 = arith.constant dense<0.000000e+00> : vector<8xf32>
    %139 = vector.multi_reduction <add>, %138, %cst_72 [1] : vector<8x256xf32> to vector<8xf32>
    %140 = vector.shape_cast %139 : vector<8xf32> to vector<8x1xf32>
    %141 = vector.extract_strided_slice %140 {offsets = [4, 0], sizes = [4, 1], strides = [1, 1]} : vector<8x1xf32> to vector<4x1xf32>
    %142 = vector.extract_strided_slice %140 {offsets = [0, 0], sizes = [4, 1], strides = [1, 1]} : vector<8x1xf32> to vector<4x1xf32>
    %143 = tpu.concatenate %141, %142 in 0 : vector<4x1xf32>, vector<4x1xf32> -> vector<8x1xf32>
    %144 = arith.addf %140, %143 : vector<8x1xf32>
    %cst_73 = arith.constant 0.001953125 : f32
    %145 = vector.broadcast %cst_73 : f32 to vector<8x1xf32>
    %146 = arith.mulf %144, %145 : vector<8x1xf32>
    %147 = arith.mulf %138, %138 : vector<8x256xf32>
    %cst_74 = arith.constant dense<0.000000e+00> : vector<8xf32>
    %148 = vector.multi_reduction <add>, %147, %cst_74 [1] : vector<8x256xf32> to vector<8xf32>
    %149 = vector.shape_cast %148 : vector<8xf32> to vector<8x1xf32>
    %150 = vector.extract_strided_slice %149 {offsets = [4, 0], sizes = [4, 1], strides = [1, 1]} : vector<8x1xf32> to vector<4x1xf32>
    %151 = vector.extract_strided_slice %149 {offsets = [0, 0], sizes = [4, 1], strides = [1, 1]} : vector<8x1xf32> to vector<4x1xf32>
    %152 = tpu.concatenate %150, %151 in 0 : vector<4x1xf32>, vector<4x1xf32> -> vector<8x1xf32>
    %153 = arith.addf %149, %152 : vector<8x1xf32>
    %cst_75 = arith.constant 0.001953125 : f32
    %154 = vector.broadcast %cst_75 : f32 to vector<8x1xf32>
    %155 = arith.mulf %153, %154 : vector<8x1xf32>
    %156 = arith.mulf %146, %146 : vector<8x1xf32>
    %157 = arith.subf %155, %156 : vector<8x1xf32>
    %158 = vector.broadcast %146 : vector<8x1xf32> to vector<8x256xf32>
    %159 = arith.subf %138, %158 : vector<8x256xf32>
    %cst_76 = arith.constant 9.99999974E-6 : f32
    %160 = vector.broadcast %cst_76 : f32 to vector<8x1xf32>
    %161 = arith.addf %157, %160 : vector<8x1xf32>
    %162 = math.rsqrt %161 : vector<8x1xf32>
    %c0_77 = arith.constant 0 : index
    %c0_78 = arith.constant 0 : index
    %163 = vector.load %arg7[%c0_77, %c0_78] : memref<8x1xf32, #tpu.memory_space<vmem>>, vector<8x1xf32>
    %164 = arith.mulf %162, %163 : vector<8x1xf32>
    %165 = vector.broadcast %164 : vector<8x1xf32> to vector<8x256xf32>
    %166 = arith.mulf %159, %165 : vector<8x256xf32>
    %c0_79 = arith.constant 0 : index
    %c0_80 = arith.constant 0 : index
    %167 = vector.load %arg8[%c0_79, %c0_80] : memref<8x1xf32, #tpu.memory_space<vmem>>, vector<8x1xf32>
    %168 = vector.broadcast %167 : vector<8x1xf32> to vector<8x256xf32>
    %169 = arith.addf %166, %168 : vector<8x256xf32>
    %170 = arith.addf %169, %25 : vector<8x256xf32>
    %cst_81 = arith.constant 0.000000e+00 : f32
    %171 = vector.broadcast %cst_81 : f32 to vector<8x256xf32>
    %172 = arith.maximumf %170, %171 : vector<8x256xf32>
    %c0_82 = arith.constant 0 : index
    %c0_83 = arith.constant 0 : index
    %173 = vector.load %arg9[%c0_82, %c0_83] : memref<8x256xf32, #tpu.memory_space<vmem>>, vector<8x256xf32>
    tpu.vector_store %arg9[%c0_82, %c0_83], %172 {strides = array<i32>} : memref<8x256xf32, #tpu.memory_space<vmem>>, vector<8x256xf32>,
    return
  }
}

</mosaic_0001>

<bundles_post_ra>
// kernel: tpu_custom_call.1
= control target key start
LH: loop header
LB: loop body
LE: loop exit
PB: predicated region body
PF: predicated region fallthrough
CT: control target
= control target key end

     0   :  { %v2041_v1 = vmov 0.0   ;;  %s2042_s11 = smov 17   ;;  %s2855_s0 = inlined_call_operand.vmem [shape: f32[8,256], index: 0, kind: input, shape index: {}]   ;;  %s2856_s1 = inlined_call_operand.vmem [shape: f32[8,72], index: 1, kind: input, shape index: {}]   ;;  %s2857_s2 = inlined_call_operand.vmem [shape: f32[8,1], index: 2, kind: input, shape index: {}]   ;;  %s2858_s3 = inlined_call_operand.vmem [shape: f32[8,1], index: 3, kind: input, shape index: {}]   ;;  %s2859_s4 = inlined_call_operand.vmem [shape: f32[8,1], index: 4, kind: input, shape index: {}]   ;;  %s2860_s5 = inlined_call_operand.vmem [shape: f32[8,72], index: 5, kind: input, shape index: {}]   ;;  %s2861_s6 = inlined_call_operand.vmem [shape: f32[8,1], index: 6, kind: input, shape index: {}]   ;;  %s2862_s7 = inlined_call_operand.vmem [shape: f32[8,1], index: 7, kind: input, shape index: {}]   ;;  %s2863_s8 = inlined_call_operand.vmem [shape: f32[8,1], index: 8, kind: input, shape index: {}]   ;;  %s2864_s9 = inlined_call_operand.hbm [shape: f32[8,256], index: 9, kind: output, shape index: {}]  }
   0x1   :  { %v2105_v0 = vld [vmem:[%s2855_s0] sm:$0xff]  ;;  %80 = vrot.lane.b32.xlu1 %v2041_v1, %s2042_s11 }
   0x2   :  { %82 = vrot.lane.b32.xlu0 %v2105_v0, %s2042_s11 }
   0x3   :  { %14 = vsyncpa [#allocation4], 0  ;;  %v2114_v2 = vld [vmem:[%s2855_s0 + $0x8] sm:$0xff]  ;;  %283 = vmatprep.mubr.f32.mxu0 %v2041_v1  ;;  %1123 = vmatprep.mubr.f32.mxu1 %v2041_v1  ;;  %s2043_s14 = smov 16   ;;  %s2044_s15 = smov 15   ;;  %v33_v3 = vlaneseq  ;;  %vm86_vm0 = vcmask 138240  }
   0x4   :  { %s2045_s16 = smov 1   ;;  %s2046_s17 = smov 127   ;;  %vm174_vm3 = vcmask 130048   ;;  %vm103_vm4 = vcmask 121856   ;;  %v191_v32 = vld [vmem:[%s2857_s2] sm:$0xff]  ;;  %vm116_vm6 = vcmask 7168  }
   0x5   :  { %170 = vrot.lane.b32.xlu1 %v2105_v0, %s2043_s14  ;;  %s2047_s18 = smov 113   ;;  %s2048_s19 = smov 112   ;;  %v34_v4 = vand.u32 127, %v33_v3  ;;  %v2050_v33 = vmov 0   ;;  %v190_v42 = vld [vmem:[%s2856_s1] sm:$0xff]  ;;  %vm197_vm8 = vcmask 588800  }
   0x6   :  { %84 = vrot.lane.b32.xlu0 %v2114_v2, %s2042_s11  ;;  %s2049_s20 = smov 111   ;;  %2010 = vset.pattern.permute.xlu1 %v2050_v33  ;;  %v217_v48 = vand.u32 4294901760, %v2114_v2  ;;  %vm135_vm9 = vcmask 1039360   ;;  %v199_v51 = vsel %vm197_vm8, %v190_v42, 0  ;;  %v219_v62 = vand.u32 4294901760, %v2105_v0 }
   0x7   :  { %v35_v5 = vadd.s32 128, %v34_v4  ;;  %v40_v8 = vand.u32 15, %v34_v4  ;;  %2009 = vset.pattern.permute.xlu0 %v2050_v33  ;;  %v2233_v59 = vand.u32 4294901760, %v199_v51  ;;  %vm148_vm10 = vcmask 924672  }
   0x8   :  { %v2231_v58 = vsub.f32 %v2114_v2, %v217_v48  ;;  %vm185_vm11 = vcmask 916480   ;;  %vm161_vm12 = vcmask 908288  }
   0x9   :  { %168 = vrot.lane.b32.xlu1 %v2041_v1, %s2043_s14  ;;  %v47_v9 = vand.u32 15, %v35_v5  ;;  %vm2162_vm1 = vcmp.ge.s32.totalorder %v40_v8, 1  ;;  %vm2209_vm7 = vcmp.le.s32.totalorder %v40_v8, 14 }
   0xa   :  { %172 = vrot.lane.b32.xlu0 %v2114_v2, %s2043_s14 }
   0xb   :  { %vm2167_vm2 = vcmp.ge.s32.totalorder %v47_v9, 1  ;;  %vm2191_vm5 = vcmp.le.s32.totalorder %v47_v9, 14 }
   0xd   :  { %101 = vrot.lane.b32.xlu1 %v2114_v2, %s2044_s15 }
   0xe   :  { %99 = vrot.lane.b32.xlu0 %v2105_v0, %s2044_s15 }
  0x11   :  { %114 = vrot.lane.b32.xlu1 %v2114_v2, %s2045_s16 }
  0x12   :  { %112 = vrot.lane.b32.xlu0 %v2105_v0, %s2045_s16 }
  0x15   :  { %110 = vrot.lane.b32.xlu1 %v2041_v1, %s2045_s16 }
  0x16   :  { %97 = vrot.lane.b32.xlu0 %v2041_v1, %s2044_s15 }
  0x19   :  { %133 = vrot.lane.b32.xlu1 %v2041_v1, %s2046_s17 }
  0x1a   :  { %131 = vrot.lane.b32.xlu0 %v2114_v2, %s2046_s17 }
  0x1d   :  { %144 = vrot.lane.b32.xlu1 %v2114_v2, %s2047_s18 }
  0x1e   :  { %129 = vrot.lane.b32.xlu0 %v2105_v0, %s2046_s17 }
  0x21   :  { %142 = vrot.lane.b32.xlu1 %v2105_v0, %s2047_s18 }
  0x22   :  { %146 = vrot.lane.b32.xlu0 %v2041_v1, %s2047_s18 }
  0x25   :  { %183 = vrot.lane.b32.xlu1 %v2041_v1, %s2048_s19 }
  0x26   :  { %181 = vrot.lane.b32.xlu0 %v2114_v2, %s2048_s19 }
  0x29   :  { %157 = vrot.lane.b32.xlu1 %v2114_v2, %s2049_s20  ;;  %v2865_v2 = vand.u32 4294901760, %v2231_v58 }
  0x2a   :  { %179 = vrot.lane.b32.xlu0 %v2105_v0, %s2048_s19 }
  0x2d   :  { %155 = vrot.lane.b32.xlu1 %v2105_v0, %s2049_s20 }
  0x2e   :  { %159 = vrot.lane.b32.xlu0 %v2041_v1, %s2049_s20 }
  0x32   :  { %194 = vperm.xlu0 %2009, %v191_v32  }
  0x73   :  { %v81_v6 = vpop.permute.xlu1 %80 }
  0x74   :  { %v83_v7 = vpop.permute.xlu0 %82 }
  0x75   :  { %v87_v11 = vsel %vm86_vm0, %v81_v6, %v83_v7  ;;  %v2243_v6 = vsub.f32 %v199_v51, %v2233_v59 }
  0x76   :  { %v91_v16 = vsel %vm2162_vm1, %v87_v11, 0.0 }
  0x77   :  { %v171_v12 = vpop.permute.xlu1 %170  ;;  %v203_v22 = vand.u32 4294901760, %v91_v16 }
  0x78   :  { %v85_v13 = vpop.permute.xlu0 %84 }
  0x79   :  { %v88_v15 = vsel %vm86_vm0, %v83_v7, %v85_v13  ;;  %v2239_v4 = vsub.f32 %v91_v16, %v203_v22 }
  0x7a   :  { %v2176_v17 = vsel %vm2167_vm2, %v88_v15, 0.0  ;;  %v2260_v15 = vsub.f32 %v2105_v0, %v219_v62  ;;  %v2274_v0 = vsub.f32 %v2231_v58, %v2865_v2 }
  0x7b   :  { %v169_v18 = vpop.permute.xlu1 %168  ;;  %v201_v23 = vand.u32 4294901760, %v2176_v17 }
  0x7c   :  { %v173_v19 = vpop.permute.xlu0 %172  ;;  %v2179_v20 = vsel %vm174_vm3, %v169_v18, %v171_v12 }
  0x7d   :  { %v2182_v21 = vsel %vm174_vm3, %v171_v12, %v173_v19  ;;  %v207_v24 = vand.u32 4294901760, %v2179_v20  ;;  %v2247_v7 = vsub.f32 %v2176_v17, %v201_v23  ;;  %v303_v19 = vand.u32 4294901760, %v2239_v4 }
  0x7e   :  { %v205_v25 = vand.u32 4294901760, %v2182_v21 }
  0x7f   :  { %v102_v26 = vpop.permute.xlu1 %101  ;;  %v2189_v29 = vpack.c.bf16 %v207_v24, %v203_v22  ;;  %v2254_v11 = vsub.f32 %v2179_v20, %v207_v24  ;;  %v2870_v20 = vand.u32 4294901760, %v2243_v6 }
  0x80   :  { %v100_v27 = vpop.permute.xlu0 %99  ;;  %v2187_v28 = vpack.c.bf16 %v205_v25, %v201_v23  ;;  %v2257_v12 = vsub.f32 %v2182_v21, %v205_v25  ;;  %v297_v21 = vand.u32 4294901760, %v2247_v7 }
  0x81   :  { %v105_v31 = vsel %vm103_vm4, %v100_v27, %v102_v26  ;;  %v315_v24 = vand.u32 4294901760, %v2254_v11 }
  0x82   :  { %1783 = vmatprep.subr.bf16.mxu0 %v2187_v28  ;;  %v2203_v34 = vsel %vm2191_vm5, %v105_v31, 0.0  ;;  %v309_v25 = vand.u32 4294901760, %v2257_v12 }
  0x83   :  { %1785 = vmatpush1.bf16.msra.mxu0 %v2189_v29  ;;  %v115_v35 = vpop.permute.xlu1 %114  ;;  %v209_v39 = vand.u32 4294901760, %v2203_v34 }
  0x84   :  { %v113_v36 = vpop.permute.xlu0 %112 }
  0x85   :  { %v118_v37 = vsel %vm116_vm6, %v113_v36, %v115_v35  ;;  %v2283_v31 = vsub.f32 %v2203_v34, %v209_v39  ;;  %v287_v34 = vsub.f32 %v2243_v6, %v2870_v20 }
  0x86   :  { %v122_v38 = vsel %vm2167_vm2, %v118_v37, 0.0 }
  0x87   :  { %v213_v40 = vand.u32 4294901760, %v122_v38  ;;  %v111_v43 = vpop.permute.xlu1 %110 }
  0x88   :  { %v98_v44 = vpop.permute.xlu0 %97  ;;  %v117_v45 = vsel %vm116_vm6, %v111_v43, %v113_v36 }
  0x89   :  { %v104_v46 = vsel %vm103_vm4, %v98_v44, %v100_v27  ;;  %v2218_v47 = vpack.c.bf16 %v213_v40, %v209_v39  ;;  %v121_v49 = vsel %vm2162_vm1, %v117_v45, 0.0  ;;  %v2262_v16 = vsub.f32 %v122_v38, %v213_v40 }
  0x8a   :  { %v108_v50 = vsel %vm2209_vm7, %v104_v46, 0.0  ;;  %v215_v52 = vand.u32 4294901760, %v121_v49  ;;  %v2871_v27 = vand.u32 4294901760, %v2260_v15  ;;  %v304_v38 = vsub.f32 %v2239_v4, %v303_v19 }
  0x8b   :  { %v211_v53 = vand.u32 4294901760, %v108_v50  ;;  %1787 = vmatprep.subr.bf16.mxu0 %v2218_v47  ;;  %v134_v54 = vpop.permute.xlu1 %133  ;;  %v2868_v32 = vand.u32 4294901760, %v2262_v16  ;;  %v298_v44 = vsub.f32 %v2247_v7, %v297_v21  ;;  %v316_v45 = vsub.f32 %v2254_v11, %v315_v24 }
  0x8c   :  { %v132_v55 = vpop.permute.xlu0 %131  ;;  %v2286_v33 = vsub.f32 %v121_v49, %v215_v52  ;;  %v310_v49 = vsub.f32 %v2257_v12, %v309_v25 }
  0x8d   :  { %v137_v56 = vsel %vm135_vm9, %v132_v55, %v134_v54  ;;  %v2228_v57 = vpack.c.bf16 %v215_v52, %v211_v53  ;;  %v2292_v40 = vsub.f32 %v108_v50, %v211_v53  ;;  %v2869_v50 = vand.u32 4294901760, %v2283_v31 }
  0x8e   :  { %v141_v60 = vsel %vm2191_vm5, %v137_v56, 0.0  ;;  %v2866_v51 = vand.u32 4294901760, %v2286_v33  ;;  %v305_v56 = vand.u32 4294901760, %v304_v38 }
  0x8f   :  { %v221_v61 = vand.u32 4294901760, %v141_v60  ;;  %1789 = vmatpush1.bf16.msra.mxu0 %v2228_v57  ;;  %v145_v63 = vpop.permute.xlu1 %144 }
  0x90   :  { %v130_v3 = vpop.permute.xlu0 %129  ;;  %v340_v38 = vsub.f32 %v2286_v33, %v2866_v51 }
  0x91   :  { %v136_v5 = vsel %vm135_vm9, %v130_v3, %v132_v55  ;;  %v2251_v9 = vpack.c.bf16 %v221_v61, %v217_v48  ;;  %v2304_v46 = vsub.f32 %v141_v60, %v221_v61  ;;  %v334_v55 = vsub.f32 %v2262_v16, %v2868_v32 }
  0x92   :  { %v140_v8 = vsel %vm2209_vm7, %v136_v5, 0.0  ;;  %v2867_v60 = vand.u32 4294901760, %v2292_v40 }
  0x93   :  { %v223_v13 = vand.u32 4294901760, %v140_v8  ;;  %1791 = vmatprep.subr.bf16.mxu0 %v2251_v9  ;;  %v143_v17 = vpop.permute.xlu1 %142 }
  0x94   :  { %v147_v18 = vpop.permute.xlu0 %146  ;;  %v149_v35 = vsel %vm148_vm10, %v143_v17, %v145_v63  ;;  %v299_v17 = vand.u32 4294901760, %v298_v44  ;;  %v328_v44 = vsub.f32 %v2292_v40, %v2867_v60 }
  0x95   :  { %v150_v22 = vsel %vm148_vm10, %v145_v63, %v147_v18  ;;  %v2267_v23 = vpack.c.bf16 %v223_v13, %v219_v62  ;;  %v153_v48 = vsel %vm2162_vm1, %v149_v35, 0.0  ;;  %v288_v62 = vand.u32 4294901760, %v287_v34 }
  0x96   :  { %v154_v26 = vsel %vm2167_vm2, %v150_v22, 0.0  ;;  %v2320_v63 = vsub.f32 %v140_v8, %v223_v13  ;;  %v227_v3 = vand.u32 4294901760, %v153_v48  ;;  %v317_v18 = vand.u32 4294901760, %v316_v45 }
  0x97   :  { %1793 = vmatpush1.bf16.msra.mxu0 %v2267_v23  ;;  %v184_v36 = vpop.permute.xlu1 %183  ;;  %v225_v39 = vand.u32 4294901760, %v154_v26  ;;  %v2872_v22 = vand.u32 4294901760, %v2304_v46  ;;  %v322_v8 = vsub.f32 %v2283_v31, %v2869_v50  ;;  %v335_v13 = vand.u32 4294901760, %v334_v55 }
  0x98   :  { %v182_v37 = vpop.permute.xlu0 %181  ;;  %v341_v50 = vand.u32 4294901760, %v340_v38  ;;  %v329_v20 = vand.u32 4294901760, %v328_v44 }
  0x99   :  { %v187_v42 = vsel %vm185_vm11, %v182_v37, %v184_v36  ;;  %v311_v36 = vand.u32 4294901760, %v310_v49  ;;  %v363_v49 = vand.u32 4294901760, %v2320_v63  ;;  %v323_v32 = vand.u32 4294901760, %v322_v8 }
  0x9a   :  { %v229_v43 = vand.u32 4294901760, %v187_v42  ;;  %v1804_v8 = vpack.c.bf16 %v341_v50, %v329_v20 }
  0x9b   :  { %v158_v52 = vpop.permute.xlu1 %157 }
  0x9c   :  { %v180_v53 = vpop.permute.xlu0 %179  ;;  %v2313_v54 = vpack.c.bf16 %v229_v43, %v225_v39  ;;  %v2324_v35 = vsub.f32 %v187_v42, %v229_v43  ;;  %v2337_v42 = vsub.f32 %v154_v26, %v225_v39 }
  0x9d   :  { %v186_v61 = vsel %vm185_vm11, %v180_v53, %v182_v37 }
  0x9e   :  { %v231_v5 = vand.u32 4294901760, %v186_v61  ;;  %1795 = vmatprep.subr.bf16.mxu0 %v2313_v54  ;;  %v381_v60 = vand.u32 4294901760, %v2324_v35 }
  0x9f   :  { %v156_v2 = vpop.permute.xlu1 %155 }
  0xa0   :  { %v160_v37 = vpop.permute.xlu0 %159  ;;  %v2329_v34 = vpack.c.bf16 %v231_v5, %v227_v3  ;;  %v162_v43 = vsel %vm161_vm12, %v156_v2, %v158_v52  ;;  %v2342_v53 = vsub.f32 %v186_v61, %v231_v5  ;;  %v358_v2 = vsub.f32 %v2304_v46, %v2872_v22 }
  0xa1   :  { %v163_v45 = vsel %vm161_vm12, %v158_v52, %v160_v37  ;;  %v166_v51 = vsel %vm2209_vm7, %v162_v43, 0.0  ;;  %v2357_v52 = vsub.f32 %v153_v48, %v227_v3  ;;  %v347_v61 = vand.u32 4294901760, %v2274_v0 }
  0xa2   :  { %v167_v55 = vsel %vm2191_vm5, %v163_v45, 0.0  ;;  %1797 = vmatpush1.bf16.msra.mxu0 %v2329_v34  ;;  %v2350_v26 = vand.u32 4294901760, %v166_v51  ;;  %v352_v5 = vsub.f32 %v2260_v15, %v2871_v27  ;;  %v369_v37 = vand.u32 4294901760, %v2337_v42 }
  0xa3   :  { %v2352_v39 = vand.u32 4294901760, %v167_v55  ;;  %v1798_v43 = vpack.c.bf16 %v311_v36, %v299_v17  ;;  %v1800_v45 = vpack.c.bf16 %v317_v18, %v305_v56  ;;  %v364_v48 = vsub.f32 %v2320_v63, %v363_v49 }
  0xa4   :  { %v387_v3 = vand.u32 4294901760, %v2342_v53  ;;  %v1802_v27 = vpack.c.bf16 %v335_v13, %v323_v32  ;;  %v359_v22 = vand.u32 4294901760, %v358_v2  ;;  %v382_v56 = vsub.f32 %v2324_v35, %v381_v60 }
  0xa5   :  { %234 = vmatprep.subr.mxu0 %v2352_v39  ;;  %v2371_v0 = vsub.f32 %v167_v55, %v2352_v39  ;;  %v375_v17 = vand.u32 4294901760, %v2357_v52  ;;  %v353_v18 = vand.u32 4294901760, %v352_v5  ;;  %v370_v36 = vsub.f32 %v2337_v42, %v369_v37 }
  0xa6   :  { %236 = vmatpush1.msra.mxu0 %v2350_v26  ;;  %v365_v38 = vand.u32 4294901760, %v364_v48  ;;  %v388_v32 = vsub.f32 %v2342_v53, %v387_v3  ;;  %v1806_v13 = vpack.c.bf16 %v359_v22, %v347_v61  ;;  %v383_v44 = vand.u32 4294901760, %v382_v56 }
  0xa7   :  { %1799 = vmatprep.subr.bf16.mxu0 %v1798_v43  ;;  %289 = vmatmul.mubr.f32.vlgmr.msra.gmra.mrb[0].mxu0 %v288_v62  ;;  %v2385_v62 = vsub.f32 %v166_v51, %v2350_v26  ;;  %v393_v55 = vand.u32 4294901760, %v2371_v0  ;;  %v371_v2 = vand.u32 4294901760, %v370_v36  ;;  %v1816_v36 = vpack.c.bf16 %v2254_v11, %v2239_v4 }
  0xa8   :  { %1801 = vmatpush1.bf16.msra.mxu0 %v1800_v45  ;;  %449 = vmatprep.mubr.f32.mxu0 %v2041_v1  ;;  %v389_v5 = vand.u32 4294901760, %v388_v32  ;;  %v1808_v45 = vpack.c.bf16 %v365_v38, %v353_v18  ;;  %v1814_v18 = vpack.c.bf16 %v2257_v12, %v2247_v7  ;;  %v1818_v38 = vpack.c.bf16 %v2262_v16, %v2283_v31 }
  0xa9   :  { %1803 = vmatprep.subr.bf16.mxu0 %v1802_v27  ;;  %v376_v27 = vsub.f32 %v2357_v52, %v375_v17  ;;  %v399_v43 = vand.u32 4294901760, %v2385_v62  ;;  %v1810_v48 = vpack.c.bf16 %v383_v44, %v371_v2  ;;  %v394_v20 = vsub.f32 %v2371_v0, %v393_v55 }
  0xaa   :  { %v1820_v32 = vpack.c.bf16 %v2286_v33, %v2292_v40  ;;  %v1826_v44 = vpack.c.bf16 %v2324_v35, %v2337_v42  ;;  %v1846_v2 = vpack.c.bf16 %v309_v25, %v297_v21  ;;  %v2889_v7 = vand.u32 4294901760, %v2292_v40  ;;  %v915_v42 = vld [vmem:[%s2859_s4] sm:$0xff] }
  0xab   :  { %v377_v50 = vand.u32 4294901760, %v376_v27  ;;  %v400_v22 = vsub.f32 %v2385_v62, %v399_v43  ;;  %v395_v61 = vand.u32 4294901760, %v394_v20  ;;  %v1828_v27 = vpack.c.bf16 %v2342_v53, %v2357_v52 }
  0xac   :  { %1805 = vmatpush1.bf16.msra.mxu0 %v1804_v8  ;;  %v1822_v8 = vpack.c.bf16 %v2304_v46, %v2231_v58  ;;  %v2888_v20 = vand.u32 4294901760, %v2262_v16  ;;  %v2890_v4 = vand.u32 4294901760, %v2286_v33  ;;  %v2891_v11 = vand.u32 4294901760, %v2231_v58 }
  0xad   :  { %1807 = vmatprep.subr.bf16.mxu0 %v1806_v13  ;;  %v1812_v51 = vpack.c.bf16 %v389_v5, %v377_v50  ;;  %v401_v56 = vand.u32 4294901760, %v400_v22  ;;  %v1824_v13 = vpack.c.bf16 %v2320_v63, %v2260_v15  ;;  %v1848_v5 = vpack.c.bf16 %v315_v24, %v303_v19 }
  0xae   :  { %v1852_v12 = vpack.c.bf16 %v2890_v4, %v2889_v7  ;;  %v2892_v19 = vand.u32 4294901760, %v2304_v46  ;;  %v2893_v21 = vand.u32 4294901760, %v2260_v15  ;;  %v1858_v24 = vpack.c.bf16 %v381_v60, %v369_v37 }
  0xaf   :  { %v1860_v58 = vpack.c.bf16 %v387_v3, %v375_v17 }
  0xb0   :  { %1809 = vmatpush1.bf16.msra.mxu0 %v1808_v45  ;;  %v2886_v45 = vand.u32 4294901760, %v2243_v6  ;;  %v1856_v16 = vpack.c.bf16 %v363_v49, %v2893_v21 }
  0xb1   :  { %1811 = vmatprep.subr.bf16.mxu0 %v1810_v48  ;;  %v2887_v48 = vand.u32 4294901760, %v2283_v31 }
  0xb3   :  { %v1850_v50 = vpack.c.bf16 %v2888_v20, %v2887_v48 }
  0xb4   :  { %1813 = vmatpush1.bf16.msra.mxu0 %v1812_v51 }
  0xb5   :  { %396 = vmatprep.subr.mxu0 %v395_v61 }
  0xb8   :  { %402 = vmatpush1.msra.mxu0 %v401_v56 }
  0xb9   :  { %1815 = vmatprep.subr.bf16.mxu0 %v1814_v18  ;;  %451 = vmatmul.mubr.f32.vlgmr.msra.gmra.mrb[0].mxu0 %v2233_v59  ;;  %v1032_v18 = vld [vmem:[%s2861_s6] sm:$0xff] }
  0xba   :  { %1817 = vmatpush1.bf16.msra.mxu0 %v1816_v36  ;;  %557 = vmatprep.mubr.f32.mxu0 %v2041_v1 }
  0xbb   :  { %1819 = vmatprep.subr.bf16.mxu0 %v1818_v38 }
  0xbe   :  { %1821 = vmatpush1.bf16.msra.mxu0 %v1820_v32 }
  0xbf   :  { %1823 = vmatprep.subr.bf16.mxu0 %v1822_v8 }
  0xc2   :  { %1825 = vmatpush1.bf16.msra.mxu0 %v1824_v13 }
  0xc3   :  { %1827 = vmatprep.subr.bf16.mxu0 %v1826_v44 }
  0xc6   :  { %1829 = vmatpush1.bf16.msra.mxu0 %v1828_v27 }
  0xc7   :  { %507 = vmatprep.subr.mxu0 %v2371_v0 }
  0xca   :  { %510 = vmatpush1.msra.mxu0 %v2385_v62 }
  0xcb   :  { %1831 = vmatprep.subr.bf16.mxu0 %v2187_v28  ;;  %560 = vmatmul.mubr.f32.vlgmr.msra.gmra.mrb[0].mxu0 %v2243_v6  ;;  %v1854_v6 = vpack.c.bf16 %v2892_v19, %v2891_v11 }
  0xcc   :  { %1833 = vmatpush1.bf16.msra.mxu0 %v2189_v29  ;;  %648 = vmatprep.mubr.f32.mxu0 %v2041_v1 }
  0xcd   :  { %1835 = vmatprep.subr.bf16.mxu0 %v2218_v47 }
  0xd0   :  { %1837 = vmatpush1.bf16.msra.mxu0 %v2228_v57 }
  0xd1   :  { %1839 = vmatprep.subr.bf16.mxu0 %v2251_v9 }
  0xd4   :  { %1841 = vmatpush1.bf16.msra.mxu0 %v2267_v23 }
  0xd5   :  { %1843 = vmatprep.subr.bf16.mxu0 %v2313_v54 }
  0xd8   :  { %1845 = vmatpush1.bf16.msra.mxu0 %v2329_v34 }
  0xd9   :  { %599 = vmatprep.subr.mxu0 %v2352_v39 }
  0xdc   :  { %601 = vmatpush1.msra.mxu0 %v2350_v26 }
  0xdd   :  { %1847 = vmatprep.subr.bf16.mxu0 %v1846_v2  ;;  %652 = vmatmul.mubr.f32.vlgmr.msra.gmra.mrb[0].mxu0 %v2886_v45 }
  0xde   :  { %1849 = vmatpush1.bf16.msra.mxu0 %v1848_v5  ;;  %776 = vmatprep.mubr.f32.mxu0 %v2041_v1 }
  0xdf   :  { %1851 = vmatprep.subr.bf16.mxu0 %v1850_v50 }
  0xe2   :  { %1853 = vmatpush1.bf16.msra.mxu0 %v1852_v12  ;;  %v1031_v12 = vld [vmem:[%s2860_s5] sm:$0xff] }
  0xe3   :  { %1855 = vmatprep.subr.bf16.mxu0 %v1854_v6 }
  0xe6   :  { %1857 = vmatpush1.bf16.msra.mxu0 %v1856_v16 }
  0xe7   :  { %1859 = vmatprep.subr.bf16.mxu0 %v1858_v24 }
  0xea   :  { %1861 = vmatpush1.bf16.msra.mxu0 %v1860_v58  ;;  %v1039_v58 = vsel %vm197_vm8, %v1031_v12, 0 }
  0xeb   :  { %725 = vmatprep.subr.mxu0 %v393_v55 }
  0xee   :  { %729 = vmatpush1.msra.mxu0 %v399_v43 }
  0xef   :  { %1863 = vmatprep.subr.bf16.mxu0 %v2187_v28  ;;  %778 = vmatmul.mubr.f32.vlgmr.msra.gmra.mrb[0].mxu0 %v2233_v59  ;;  %v195_v28 = vpop.permute.xlu0 %194 }
  0xf0   :  { %1865 = vmatpush1.bf16.msra.mxu0 %v2189_v29  ;;  %866 = vmatprep.mubr.f32.mxu0 %v2041_v1 }
  0xf1   :  { %1867 = vmatprep.subr.bf16.mxu0 %v2218_v47 }
  0xf4   :  { %1869 = vmatpush1.bf16.msra.mxu0 %v2228_v57 }
  0xf5   :  { %1871 = vmatprep.subr.bf16.mxu0 %v2251_v9 }
  0xf8   :  { %1873 = vmatpush1.bf16.msra.mxu0 %v2267_v23 }
  0xf9   :  { %1875 = vmatprep.subr.bf16.mxu0 %v2313_v54 }
  0xfc   :  { %1877 = vmatpush1.bf16.msra.mxu0 %v2329_v34 }
  0xfd   :  { %817 = vmatprep.subr.mxu0 %v2352_v39 }
 0x100   :  { %819 = vmatpush1.msra.mxu0 %v2350_v26  ;;  %v906_v26 = vld [vmem:[%s2858_s3] sm:$0xff] }
 0x101   :  { %868 = vmatmul.mubr.f32.vlgmr.msra.gmra.mrb[0].mxu0 %v2233_v59 }
 0x1d4   :  { %v869_v29 = vpop.f32.mrb[0].mxu0 }
 0x1d5   :  { %v1974_v15 = vadd.f32 %v869_v29, %v195_v28  ;;  %v871_v47 = vpop.f32.mrb[1].mxu0 }
 0x1d6   :  { %v1975_v25 = vadd.f32 %v871_v47, %v195_v28 }
 0x1d7   :  { %v884_v57 = vmul.f32 %v1974_v15, %v1974_v15 }
 0x1d8   :  { %v874_v31 = vadd.f32 %v1975_v25, %v1974_v15  ;;  %v885_v9 = vmul.f32 %v1975_v25, %v1975_v25 }
 0x1da   :  { %875 = vadd.xlane.f32.xlu1 %v874_v31  ;;  %v886_v23 = vadd.f32 %v885_v9, %v884_v57  ;;  %v2564_v31 = vand.u32 4294901760, %v1039_v58 }
 0x1dc   :  { %887 = vadd.xlane.f32.xlu0 %v886_v23 }
 0x267   :  { %v876_v33 = vpop.xlane.xlu1 %875 }
 0x268   :  { %v878_v40 = vrot.slane %v876_v33, 4 }
 0x269   :  { %v888_v46 = vpop.xlane.xlu0 %887 }
 0x26a   :  { %v882_v54 = vadd.f32 %v878_v40, %v876_v33  ;;  %v890_v60 = vrot.slane %v888_v46, 4 }
 0x26c   :  { %v883_v63 = vmul.f32 0.001953125, %v882_v54  ;;  %v893_v35 = vadd.f32 %v890_v60, %v888_v46 }
 0x26e   :  { %v895_v34 = vmul.f32 %v883_v63, %v883_v63  ;;  %v894_v59 = vmul.f32 0.001953125, %v893_v35  ;;  %899 = vperm.xlu1 %2010, %v883_v63  }
 0x270   :  { %v896_v49 = vsub.f32 %v894_v59, %v895_v34  ;;  %v2579_v34 = vsub.f32 %v1039_v58, %v2564_v31 }
 0x272   :  { %v904_v53 = vadd.f32 1e-05, %v896_v49  ;;  %918 = vperm.xlu1 %2010, %v915_v42  }
 0x274   :  { %2011 = vrsqrt.f32 %v904_v53 }
 0x276   :  { %933 = vrot.lane.b32.xlu1 %v2041_v1, %s2042_s11 }
 0x27a   :  { %945 = vrot.lane.b32.xlu1 %v2041_v1, %s2044_s15 }
 0x27e   :  { %v2012_v39 = vpop.eup %2011  ;;  %991 = vrot.lane.b32.xlu1 %v2041_v1, %s2047_s18 }
 0x27f   :  { %v907_v52 = vmul.f32 %v2012_v39, %v906_v26 }
 0x281   :  { %910 = vperm.xlu0 %2009, %v907_v52  }
 0x285   :  { %1011 = vrot.lane.b32.xlu0 %v2041_v1, %s2043_s14 }
 0x289   :  { %957 = vrot.lane.b32.xlu0 %v2041_v1, %s2045_s16 }
 0x28d   :  { %979 = vrot.lane.b32.xlu0 %v2041_v1, %s2046_s17 }
 0x291   :  { %1025 = vrot.lane.b32.xlu0 %v2041_v1, %s2048_s19 }
 0x2ed   :  { %v900_v37 = vpop.permute.xlu1 %899 }
 0x2ee   :  { %v902_v3 = vsub.f32 %v1974_v15, %v900_v37  ;;  %v903_v0 = vsub.f32 %v1975_v25, %v900_v37 }
 0x2f1   :  { %v919_v43 = vpop.permute.xlu1 %918 }
 0x2f5   :  { %v934_v38 = vpop.permute.xlu1 %933 }
 0x2f9   :  { %v946_v8 = vpop.permute.xlu1 %945 }
 0x2fd   :  { %v992_v44 = vpop.permute.xlu1 %991 }
 0x300   :  { %v911_v17 = vpop.permute.xlu0 %910 }
 0x301   :  { %v913_v62 = vmul.f32 %v911_v17, %v902_v3  ;;  %v914_v55 = vmul.f32 %v911_v17, %v903_v0 }
 0x303   :  { %v921_v51 = vadd.f32 %v919_v43, %v913_v62  ;;  %v922_v22 = vadd.f32 %v919_v43, %v914_v55  ;;  %v1126_v55 = vand.u32 4294901760, %v2579_v34 }
 0x304   :  { %v1012_v36 = vpop.permute.xlu0 %1011 }
 0x305   :  { %v2502_v61 = vmax.f32 %v921_v51, 0.0  ;;  %v2504_v56 = vmax.f32 %v922_v22, 0.0 }
 0x307   :  { %937 = vrot.lane.b32.xlu0 %v2504_v56, %s2042_s11  ;;  %935 = vrot.lane.b32.xlu1 %v2502_v61, %s2042_s11  ;;  %v1057_v33 = vand.u32 4294901760, %v2504_v56  ;;  %v1059_v52 = vand.u32 4294901760, %v2502_v61 }
 0x308   :  { %v958_v32 = vpop.permute.xlu0 %957 }
 0x309   :  { %v2584_v3 = vsub.f32 %v2504_v56, %v1057_v33 }
 0x30b   :  { %1013 = vrot.lane.b32.xlu0 %v2502_v61, %s2043_s14  ;;  %1015 = vrot.lane.b32.xlu1 %v2504_v56, %s2043_s14 }
 0x30c   :  { %v980_v13 = vpop.permute.xlu0 %979 }
 0x30f   :  { %949 = vrot.lane.b32.xlu0 %v2504_v56, %s2044_s15  ;;  %947 = vrot.lane.b32.xlu1 %v2502_v61, %s2044_s15 }
 0x310   :  { %v2543_v27 = vpop.permute.xlu0 %1025 }
 0x313   :  { %961 = vrot.lane.b32.xlu0 %v2504_v56, %s2045_s16  ;;  %959 = vrot.lane.b32.xlu1 %v2502_v61, %s2045_s16 }
 0x317   :  { %989 = vrot.lane.b32.xlu0 %v2504_v56, %s2047_s18  ;;  %977 = vrot.lane.b32.xlu1 %v2504_v56, %s2046_s17 }
 0x31b   :  { %987 = vrot.lane.b32.xlu0 %v2502_v61, %s2047_s18  ;;  %975 = vrot.lane.b32.xlu1 %v2502_v61, %s2046_s17 }
 0x31f   :  { %1001 = vrot.lane.b32.xlu0 %v2504_v56, %s2049_s20  ;;  %1023 = vrot.lane.b32.xlu1 %v2504_v56, %s2048_s19 }
 0x323   :  { %999 = vrot.lane.b32.xlu0 %v2502_v61, %s2049_s20  ;;  %1021 = vrot.lane.b32.xlu1 %v2502_v61, %s2048_s19 }
 0x327   :  { %1003 = vrot.lane.b32.xlu1 %v2041_v1, %s2049_s20 }
 0x32b   :  { %1035 = vperm.xlu1 %2010, %v1032_v18  }
 0x379   :  { %v936_v2 = vpop.permute.xlu1 %935  ;;  %v938_v5 = vpop.permute.xlu0 %937 }
 0x37a   :  { %v939_v45 = vsel %vm86_vm0, %v934_v38, %v936_v2  ;;  %v940_v48 = vsel %vm86_vm0, %v936_v2, %v938_v5 }
 0x37b   :  { %v943_v20 = vsel %vm2162_vm1, %v939_v45, 0.0  ;;  %v944_v50 = vsel %vm2167_vm2, %v940_v48, 0.0  ;;  %v1185_v45 = vand.u32 4294901760, %v2584_v3 }
 0x37c   :  { %v1043_v6 = vand.u32 4294901760, %v943_v20  ;;  %v1041_v21 = vand.u32 4294901760, %v944_v50 }
 0x37d   :  { %v1016_v7 = vpop.permute.xlu1 %1015  ;;  %v1014_v4 = vpop.permute.xlu0 %1013 }
 0x37e   :  { %v1017_v11 = vsel %vm174_vm3, %v1012_v36, %v1014_v4  ;;  %v1018_v19 = vsel %vm174_vm3, %v1014_v4, %v1016_v7  ;;  %v2593_v43 = vsub.f32 %v944_v50, %v1041_v21 }
 0x37f   :  { %v1045_v16 = vand.u32 4294901760, %v1018_v19  ;;  %v1047_v24 = vand.u32 4294901760, %v1017_v11 }
 0x381   :  { %v948_v28 = vpop.permute.xlu1 %947  ;;  %v950_v29 = vpop.permute.xlu0 %949  ;;  %v2557_v15 = vpack.c.bf16 %v1045_v16, %v1041_v21  ;;  %v2559_v47 = vpack.c.bf16 %v1047_v24, %v1043_v6  ;;  %v2595_v22 = vsub.f32 %v1018_v19, %v1045_v16  ;;  %v2597_v18 = vsub.f32 %v1017_v11, %v1047_v24 }
 0x382   :  { %v951_v25 = vsel %vm103_vm4, %v946_v8, %v948_v28  ;;  %v952_v57 = vsel %vm103_vm4, %v948_v28, %v950_v29  ;;  %v2604_v8 = vsub.f32 %v943_v20, %v1043_v6 }
 0x383   :  { %1879 = vmatprep.subr.bf16.mxu1 %v2557_v15  ;;  %v955_v40 = vsel %vm2209_vm7, %v951_v25, 0.0  ;;  %v956_v46 = vsel %vm2191_vm5, %v952_v57, 0.0  ;;  %v1149_v7 = vand.u32 4294901760, %v2595_v22  ;;  %v1155_v4 = vand.u32 4294901760, %v2597_v18 }
 0x384   :  { %1881 = vmatpush1.bf16.msra.mxu1 %v2559_v47  ;;  %v1051_v49 = vand.u32 4294901760, %v955_v40  ;;  %v1049_v53 = vand.u32 4294901760, %v956_v46  ;;  %v1143_v21 = vand.u32 4294901760, %v2604_v8 }
 0x385   :  { %v960_v9 = vpop.permute.xlu1 %959  ;;  %v962_v23 = vpop.permute.xlu0 %961  ;;  %v1150_v10 = vsub.f32 %v2595_v22, %v1149_v7 }
 0x386   :  { %v963_v54 = vsel %vm116_vm6, %v958_v32, %v960_v9  ;;  %v964_v60 = vsel %vm116_vm6, %v960_v9, %v962_v23  ;;  %v2602_v32 = vsub.f32 %v2502_v61, %v1059_v52  ;;  %v1137_v61 = vand.u32 4294901760, %v2593_v43 }
 0x387   :  { %v967_v63 = vsel %vm2162_vm1, %v963_v54, 0.0  ;;  %v968_v35 = vsel %vm2167_vm2, %v964_v60, 0.0  ;;  %v2629_v16 = vsub.f32 %v956_v46, %v1049_v53  ;;  %v2649_v46 = vsub.f32 %v955_v40, %v1051_v49 }
 0x388   :  { %v1055_v59 = vand.u32 4294901760, %v967_v63  ;;  %v1053_v42 = vand.u32 4294901760, %v968_v35  ;;  %v1191_v6 = vand.u32 4294901760, %v2602_v32 }
 0x389   :  { %v978_v26 = vpop.permute.xlu1 %977  ;;  %v990_v39 = vpop.permute.xlu0 %989 }
 0x38a   :  { %v982_v37 = vsel %vm135_vm9, %v978_v26, %v980_v13  ;;  %v2588_v17 = vpack.c.bf16 %v1053_v42, %v1049_v53  ;;  %v2590_v62 = vpack.c.bf16 %v1055_v59, %v1051_v49  ;;  %v994_v36 = vsel %vm148_vm10, %v990_v39, %v992_v44 }
 0x38b   :  { %v986_v0 = vsel %vm2191_vm5, %v982_v37, 0.0  ;;  %v2615_v44 = vsub.f32 %v2579_v34, %v1126_v55  ;;  %v2619_v48 = vsub.f32 %v968_v35, %v1053_v42  ;;  %v998_v20 = vsel %vm2167_vm2, %v994_v36, 0.0 }
 0x38c   :  { %v1061_v51 = vand.u32 4294901760, %v986_v0  ;;  %1883 = vmatprep.subr.bf16.mxu1 %v2588_v17  ;;  %v2631_v24 = vsub.f32 %v967_v63, %v1055_v59  ;;  %v1065_v58 = vand.u32 4294901760, %v998_v20  ;;  %v1144_v35 = vsub.f32 %v2604_v8, %v1143_v21 }
 0x38d   :  { %v976_v56 = vpop.permute.xlu1 %975  ;;  %v988_v38 = vpop.permute.xlu0 %987  ;;  %1885 = vmatpush1.bf16.msra.mxu1 %v2590_v62  ;;  %v1128_v25 = vand.u32 4294901760, %v2615_v44  ;;  %v1173_v57 = vand.u32 4294901760, %v2619_v48  ;;  %v1161_v59 = vand.u32 4294901760, %v2629_v16 }
 0x38e   :  { %v981_v13 = vsel %vm135_vm9, %v976_v56, %v978_v26  ;;  %v2610_v5 = vpack.c.bf16 %v1061_v51, %v1057_v33  ;;  %v993_v12 = vsel %vm148_vm10, %v988_v38, %v990_v39  ;;  %v2639_v9 = vsub.f32 %v986_v0, %v1061_v51 }
 0x38f   :  { %v985_v2 = vsel %vm2209_vm7, %v981_v13, 0.0  ;;  %v997_v23 = vsel %vm2162_vm1, %v993_v12, 0.0  ;;  %v1138_v33 = vsub.f32 %v2593_v43, %v1137_v61  ;;  %v1179_v42 = vand.u32 4294901760, %v2631_v24 }
 0x390   :  { %v1063_v50 = vand.u32 4294901760, %v985_v2  ;;  %1887 = vmatprep.subr.bf16.mxu1 %v2610_v5  ;;  %v1067_v53 = vand.u32 4294901760, %v997_v23  ;;  %v1174_v51 = vsub.f32 %v2619_v48, %v1173_v57  ;;  %v1167_v56 = vand.u32 4294901760, %v2649_v46 }
 0x391   :  { %v1024_v11 = vpop.permute.xlu1 %1023  ;;  %v1002_v19 = vpop.permute.xlu0 %1001  ;;  %v1139_v0 = vand.u32 4294901760, %v1138_v33  ;;  %v2676_v44 = vsub.f32 %v998_v20, %v1065_v58 }
 0x392   :  { %v1028_v14 = vsel %vm185_vm11, %v1024_v11, %v2543_v27  ;;  %v2635_v29 = vpack.c.bf16 %v1063_v50, %v1059_v52  ;;  %v1156_v27 = vsub.f32 %v2597_v18, %v1155_v4  ;;  %v2663_v49 = vsub.f32 %v985_v2, %v1063_v50 }
 0x393   :  { %v1069_v28 = vand.u32 4294901760, %v1028_v14  ;;  %v2873_v52 = vand.u32 4294901760, %v2639_v9  ;;  %v1151_v2 = vand.u32 4294901760, %v1150_v10  ;;  %v2702_v10 = vsub.f32 %v997_v23, %v1067_v53 }
 0x394   :  { %1889 = vmatpush1.bf16.msra.mxu1 %v2635_v29  ;;  %v1157_v36 = vand.u32 4294901760, %v1156_v27 }
 0x395   :  { %v1022_v54 = vpop.permute.xlu1 %1021  ;;  %v1000_v60 = vpop.permute.xlu0 %999  ;;  %v2652_v63 = vpack.c.bf16 %v1069_v28, %v1065_v58  ;;  %v2668_v37 = vsub.f32 %v1028_v14, %v1069_v28  ;;  %v1180_v14 = vsub.f32 %v2631_v24, %v1179_v42  ;;  %v2874_v28 = vand.u32 4294901760, %v2663_v49 }
 0x396   :  { %v1027_v40 = vsel %vm185_vm11, %v1022_v54, %v1024_v11  ;;  %v1005_v39 = vsel %vm161_vm12, %v1000_v60, %v1002_v19  ;;  %v1162_v11 = vsub.f32 %v2629_v16, %v1161_v59  ;;  %v1175_v58 = vand.u32 4294901760, %v1174_v51 }
 0x397   :  { %v1071_v26 = vand.u32 4294901760, %v1027_v40  ;;  %1891 = vmatprep.subr.bf16.mxu1 %v2652_v63  ;;  %v1009_v50 = vsel %vm2209_vm7, %v1005_v39, 0.0  ;;  %v2875_v41 = vand.u32 4294901760, %v2668_v37  ;;  %v1198_v27 = vsub.f32 %v2639_v9, %v2873_v52 }
 0x398   :  { %v1145_v54 = vand.u32 4294901760, %v1144_v35  ;;  %v1168_v60 = vsub.f32 %v2649_v46, %v1167_v56  ;;  %v2704_v30 = vand.u32 4294901760, %v1009_v50  ;;  %v1163_v39 = vand.u32 4294901760, %v1162_v11 }
 0x399   :  { %v1004_v38 = vpop.permute.xlu1 %1003  ;;  %v2674_v13 = vpack.c.bf16 %v1071_v26, %v1067_v53  ;;  %v2688_v33 = vsub.f32 %v1027_v40, %v1071_v26  ;;  %v2877_v40 = vand.u32 4294901760, %v2676_v44  ;;  %v1894_v26 = vpack.c.bf16 %v1151_v2, %v1139_v0 }
 0x39a   :  { %v1006_v12 = vsel %vm161_vm12, %v1002_v19, %v1004_v38  ;;  %v1186_v51 = vsub.f32 %v2584_v3, %v1185_v45  ;;  %v1181_v38 = vand.u32 4294901760, %v1180_v14  ;;  %v1204_v35 = vsub.f32 %v2663_v49, %v2874_v28 }
 0x39b   :  { %v1010_v20 = vsel %vm2191_vm5, %v1006_v12, 0.0  ;;  %1893 = vmatpush1.bf16.msra.mxu1 %v2674_v13  ;;  %v2876_v23 = vand.u32 4294901760, %v2688_v33  ;;  %v1896_v53 = vpack.c.bf16 %v1157_v36, %v1145_v54  ;;  %v1898_v0 = vpack.c.bf16 %v1175_v58, %v1163_v39 }
 0x39c   :  { %v2694_v19 = vand.u32 4294901760, %v1010_v20  ;;  %v1199_v2 = vand.u32 4294901760, %v1198_v27  ;;  %v1222_v11 = vsub.f32 %v2668_v37, %v2875_v41  ;;  %v1169_v14 = vand.u32 4294901760, %v1168_v60 }
 0x39d   :  { %v1215_v52 = vand.u32 4294901760, %v2702_v10  ;;  %v1192_v28 = vsub.f32 %v2602_v32, %v1191_v6  ;;  %v1187_v36 = vand.u32 4294901760, %v1186_v51  ;;  %v1228_v58 = vsub.f32 %v2688_v33, %v2876_v23 }
 0x39e   :  { %1074 = vmatprep.subr.mxu1 %v2694_v19  ;;  %v2717_v12 = vsub.f32 %v1010_v20, %v2694_v19  ;;  %v1205_v20 = vand.u32 4294901760, %v1204_v35  ;;  %v2734_v27 = vsub.f32 %v1009_v50, %v2704_v30  ;;  %v1900_v54 = vpack.c.bf16 %v1181_v38, %v1169_v14 }
 0x39f   :  { %1076 = vmatpush1.msra.mxu1 %v2704_v30  ;;  %v1902_v60 = vpack.c.bf16 %v1199_v2, %v1187_v36  ;;  %v1216_v51 = vsub.f32 %v2702_v10, %v1215_v52  ;;  %v1910_v36 = vpack.c.bf16 %v2595_v22, %v2593_v43  ;;  %v1948_v43 = vpack.c.bf16 %v1179_v42, %v1167_v56 }
 0x3a0   :  { %1895 = vmatprep.subr.bf16.mxu1 %v1894_v26  ;;  %1129 = vmatmul.mubr.f32.vlgmr.msra.gmra.mrb[0].mxu1 %v1128_v25  ;;  %v1210_v25 = vsub.f32 %v2676_v44, %v2877_v40  ;;  %v1223_v26 = vand.u32 4294901760, %v1222_v11  ;;  %v1233_v39 = vand.u32 4294901760, %v2717_v12  ;;  %v1239_v41 = vand.u32 4294901760, %v2734_v27 }
 0x3a1   :  { %1897 = vmatpush1.bf16.msra.mxu1 %v1896_v53  ;;  %1289 = vmatprep.mubr.f32.mxu1 %v2041_v1  ;;  %v1193_v53 = vand.u32 4294901760, %v1192_v28  ;;  %v1217_v38 = vand.u32 4294901760, %v1216_v51  ;;  %v1944_v51 = vpack.c.bf16 %v1155_v4, %v1143_v21  ;;  %v2894_v22 = vand.u32 4294901760, %v2639_v9 }
 0x3a2   :  { %1899 = vmatprep.subr.bf16.mxu1 %v1898_v0  ;;  %v1211_v35 = vand.u32 4294901760, %v1210_v25  ;;  %v1229_v0 = vand.u32 4294901760, %v1228_v58  ;;  %v1234_v50 = vsub.f32 %v2717_v12, %v1233_v39  ;;  %v1240_v11 = vsub.f32 %v2734_v27, %v1239_v41 }
 0x3a3   :  { %v1904_v23 = vpack.c.bf16 %v1205_v20, %v1193_v53  ;;  %v1912_v25 = vpack.c.bf16 %v2597_v18, %v2604_v8  ;;  %v1918_v20 = vpack.c.bf16 %v2639_v9, %v2584_v3  ;;  %v1920_v58 = vpack.c.bf16 %v2663_v49, %v2602_v32 }
 0x3a4   :  { %v1906_v40 = vpack.c.bf16 %v1223_v26, %v1211_v35  ;;  %v1908_v2 = vpack.c.bf16 %v1229_v0, %v1217_v38  ;;  %v1235_v28 = vand.u32 4294901760, %v1234_v50  ;;  %v1241_v14 = vand.u32 4294901760, %v1240_v11  ;;  %v2016_v35 = vld [vmem:[%s2855_s0 + $0x8] sm:$0xff] }
 0x3a5   :  { %1901 = vmatpush1.bf16.msra.mxu1 %v1900_v54  ;;  %v1922_v54 = vpack.c.bf16 %v2668_v37, %v2676_v44  ;;  %v1942_v26 = vpack.c.bf16 %v1149_v7, %v1137_v61  ;;  %v1946_v53 = vpack.c.bf16 %v1173_v57, %v1161_v59  ;;  %v2896_v8 = vand.u32 4294901760, %v2676_v44 }
 0x3a6   :  { %1903 = vmatprep.subr.bf16.mxu1 %v1902_v60  ;;  %v1924_v60 = vpack.c.bf16 %v2688_v33, %v2702_v10  ;;  %v2897_v61 = vand.u32 4294901760, %v2668_v37  ;;  %v2898_v3 = vand.u32 4294901760, %v2688_v33 }
 0x3a8   :  { %v1956_v7 = vpack.c.bf16 %v2898_v3, %v1215_v52 }
 0x3a9   :  { %1905 = vmatpush1.bf16.msra.mxu1 %v1904_v23  ;;  %v1916_v23 = vpack.c.bf16 %v2631_v24, %v2649_v46 }
 0x3aa   :  { %1907 = vmatprep.subr.bf16.mxu1 %v1906_v40  ;;  %v1914_v40 = vpack.c.bf16 %v2619_v48, %v2629_v16  ;;  %v1954_v48 = vpack.c.bf16 %v2897_v61, %v2896_v8 }
 0x3ad   :  { %1909 = vmatpush1.bf16.msra.mxu1 %v1908_v2 }
 0x3ae   :  { %1236 = vmatprep.subr.mxu1 %v1235_v28 }
 0x3b1   :  { %1242 = vmatpush1.msra.mxu1 %v1241_v14 }
 0x3b2   :  { %1911 = vmatprep.subr.bf16.mxu1 %v1910_v36  ;;  %1291 = vmatmul.mubr.f32.vlgmr.msra.gmra.mrb[0].mxu1 %v2564_v31 }
 0x3b3   :  { %1913 = vmatpush1.bf16.msra.mxu1 %v1912_v25  ;;  %1397 = vmatprep.mubr.f32.mxu1 %v2041_v1 }
 0x3b4   :  { %1915 = vmatprep.subr.bf16.mxu1 %v1914_v40 }
 0x3b7   :  { %1917 = vmatpush1.bf16.msra.mxu1 %v1916_v23 }
 0x3b8   :  { %1919 = vmatprep.subr.bf16.mxu1 %v1918_v20 }
 0x3bb   :  { %1921 = vmatpush1.bf16.msra.mxu1 %v1920_v58 }
 0x3bc   :  { %1923 = vmatprep.subr.bf16.mxu1 %v1922_v54 }
 0x3bf   :  { %1925 = vmatpush1.bf16.msra.mxu1 %v1924_v60 }
 0x3c0   :  { %1347 = vmatprep.subr.mxu1 %v2717_v12 }
 0x3c3   :  { %1350 = vmatpush1.msra.mxu1 %v2734_v27  ;;  %v2015_v27 = vld [vmem:[%s2855_s0] sm:$0xff] }
 0x3c4   :  { %1927 = vmatprep.subr.bf16.mxu1 %v2557_v15  ;;  %1400 = vmatmul.mubr.f32.vlgmr.msra.gmra.mrb[0].mxu1 %v2579_v34  ;;  %v1950_v34 = vpack.c.bf16 %v2894_v22, %v1185_v45 }
 0x3c5   :  { %1929 = vmatpush1.bf16.msra.mxu1 %v2559_v47  ;;  %1488 = vmatprep.mubr.f32.mxu1 %v2041_v1 }
 0x3c6   :  { %1931 = vmatprep.subr.bf16.mxu1 %v2588_v17 }
 0x3c9   :  { %1933 = vmatpush1.bf16.msra.mxu1 %v2590_v62 }
 0x3ca   :  { %1935 = vmatprep.subr.bf16.mxu1 %v2610_v5 }
 0x3cd   :  { %1937 = vmatpush1.bf16.msra.mxu1 %v2635_v29 }
 0x3ce   :  { %1939 = vmatprep.subr.bf16.mxu1 %v2652_v63 }
 0x3d1   :  { %1941 = vmatpush1.bf16.msra.mxu1 %v2674_v13 }
 0x3d2   :  { %1439 = vmatprep.subr.mxu1 %v2694_v19 }
 0x3d5   :  { %1441 = vmatpush1.msra.mxu1 %v2704_v30 }
 0x3d6   :  { %1943 = vmatprep.subr.bf16.mxu1 %v1942_v26  ;;  %1492 = vmatmul.mubr.f32.vlgmr.msra.gmra.mrb[0].mxu1 %v1126_v55  ;;  %v2895_v55 = vand.u32 4294901760, %v2663_v49  ;;  %v1745_v49 = vld [vmem:[%s2862_s7] sm:$0xff] }
 0x3d7   :  { %1945 = vmatpush1.bf16.msra.mxu1 %v1944_v51  ;;  %1616 = vmatprep.mubr.f32.mxu1 %v2041_v1 }
 0x3d8   :  { %1947 = vmatprep.subr.bf16.mxu1 %v1946_v53  ;;  %v1952_v18 = vpack.c.bf16 %v2895_v55, %v1191_v6 }
 0x3db   :  { %1949 = vmatpush1.bf16.msra.mxu1 %v1948_v43 }
 0x3dc   :  { %1951 = vmatprep.subr.bf16.mxu1 %v1950_v34 }
 0x3df   :  { %1953 = vmatpush1.bf16.msra.mxu1 %v1952_v18 }
 0x3e0   :  { %1955 = vmatprep.subr.bf16.mxu1 %v1954_v48 }
 0x3e3   :  { %1957 = vmatpush1.bf16.msra.mxu1 %v1956_v7 }
 0x3e4   :  { %1565 = vmatprep.subr.mxu1 %v1233_v39 }
 0x3e7   :  { %1569 = vmatpush1.msra.mxu1 %v1239_v41 }
 0x3e8   :  { %1959 = vmatprep.subr.bf16.mxu1 %v2557_v15  ;;  %1618 = vmatmul.mubr.f32.vlgmr.msra.gmra.mrb[0].mxu1 %v2564_v31  ;;  %v1036_v15 = vpop.permute.xlu1 %1035 }
 0x3e9   :  { %1961 = vmatpush1.bf16.msra.mxu1 %v2559_v47  ;;  %1706 = vmatprep.mubr.f32.mxu1 %v2041_v1 }
 0x3ea   :  { %1963 = vmatprep.subr.bf16.mxu1 %v2588_v17 }
 0x3ed   :  { %1965 = vmatpush1.bf16.msra.mxu1 %v2590_v62 }
 0x3ee   :  { %1967 = vmatprep.subr.bf16.mxu1 %v2610_v5 }
 0x3f1   :  { %1969 = vmatpush1.bf16.msra.mxu1 %v2635_v29 }
 0x3f2   :  { %1971 = vmatprep.subr.bf16.mxu1 %v2652_v63  ;;  %v1754_v63 = vld [vmem:[%s2863_s8] sm:$0xff]  ;;  %s2051_s8 = smov [#allocation3]  }
 0x3f3   :  { %s1774_s10 = sshll.u32 %s2051_s8, 4  ;;  %s1775_s10 = int_to_ptr.vmem [resolvable:$true] %s1774_s10 }
 0x3f4   :  { %s2017_s14 = scalar_lea.vmem %s1775_s10, 256  ;;  %p2022_p1 = scmp.lt.s32.totalorder %s1775_s10, %s1775_s10 }
 0x3f5   :  { %1973 = vmatpush1.bf16.msra.mxu1 %v2674_v13  ;;  %p2018_p0 = scmp.ne.s32.totalorder %s1775_s10, %s2017_s14  ;;  %p2023_p2 = scmp.lt.s32.totalorder %s2017_s14, %s2017_s14 }
 0x3f6   :  { %1657 = vmatprep.subr.mxu1 %v2694_v19 }
 0x3f7   :  { %p2024_p3 = por %p2023_p2, %p2022_p1 }
 0x3f9   :  { %1659 = vmatpush1.msra.mxu1 %v2704_v30  ;;  %p2025_p4 = pnand %p2024_p3, %p2018_p0 }
 0x3fa   :  { %1708 = vmatmul.mubr.f32.vlgmr.msra.gmra.mrb[0].mxu1 %v2564_v31 }
 0x4cd   :  { %v1709_v1 = vpop.f32.mrb[0].mxu1 }
 0x4ce   :  { %v1976_v47 = vadd.f32 %v1709_v1, %v1036_v15  ;;  %v1711_v17 = vpop.f32.mrb[1].mxu1 }
 0x4cf   :  { %v1977_v32 = vadd.f32 %v1711_v17, %v1036_v15 }
 0x4d0   :  { %v1723_v62 = vmul.f32 %v1976_v47, %v1976_v47 }
 0x4d1   :  { %v1714_v45 = vadd.f32 %v1977_v32, %v1976_v47  ;;  %v1724_v5 = vmul.f32 %v1977_v32, %v1977_v32 }
 0x4d3   :  { %1715 = vadd.xlane.f32.xlu0 %v1714_v45  ;;  %v1725_v4 = vadd.f32 %v1724_v5, %v1723_v62 }
 0x4d5   :  { %1726 = vadd.xlane.f32.xlu1 %v1725_v4 }
 0x560   :  { %v1716_v6 = vpop.xlane.xlu0 %1715 }
 0x561   :  { %v1718_v21 = vrot.slane %v1716_v6, 4 }
 0x562   :  { %v1727_v16 = vpop.xlane.xlu1 %1726 }
 0x563   :  { %v1721_v24 = vadd.f32 %v1718_v21, %v1716_v6  ;;  %v1729_v29 = vrot.slane %v1727_v16, 4 }
 0x565   :  { %v1722_v57 = vmul.f32 0.001953125, %v1721_v24  ;;  %v1732_v9 = vadd.f32 %v1729_v29, %v1727_v16 }
 0x567   :  { %v1734_v46 = vmul.f32 %v1722_v57, %v1722_v57  ;;  %v1733_v31 = vmul.f32 0.001953125, %v1732_v9  ;;  %1738 = vperm.xlu0 %2009, %v1722_v57  }
 0x569   :  { %v1735_v59 = vsub.f32 %v1733_v31, %v1734_v46 }
 0x56b   :  { %v1743_v42 = vadd.f32 1e-05, %v1735_v59  ;;  %1757 = vperm.xlu0 %2009, %v1754_v63  }
 0x56d   :  { %2013 = vrsqrt.f32 %v1743_v42 }
 0x577   :  { %v2014_v52 = vpop.eup %2013 }
 0x578   :  { %v1746_v37 = vmul.f32 %v2014_v52, %v1745_v49 }
 0x57a   :  { %1749 = vperm.xlu1 %2010, %v1746_v37  }
 0x5e6   :  { %v1739_v56 = vpop.permute.xlu0 %1738 }
 0x5e7   :  { %v1741_v13 = vsub.f32 %v1976_v47, %v1739_v56  ;;  %v1742_v44 = vsub.f32 %v1977_v32, %v1739_v56 }
 0x5ea   :  { %v1758_v10 = vpop.permute.xlu0 %1757 }
 0x5f9   :  { %v1750_v33 = vpop.permute.xlu1 %1749 }
 0x5fa   :  { %v1752_v41 = vmul.f32 %v1750_v33, %v1741_v13  ;;  %v1753_v19 = vmul.f32 %v1750_v33, %v1742_v44 }
 0x5fc   :  { %v1760_v30 = vadd.f32 %v1758_v10, %v1752_v41  ;;  %v1761_v12 = vadd.f32 %v1758_v10, %v1753_v19 }
 0x5fe   :  { %v1762_v39 = vadd.f32 %v2015_v27, %v1760_v30  ;;  %v1763_v0 = vadd.f32 %v2016_v35, %v1761_v12 }
 0x600   :  { %v1764_v50 = vmax.f32 %v1762_v39, 0.0  ;;  %v1765_v38 = vmax.f32 %v1763_v0, 0.0 }
 0x602   :  { %1766 = vst [vmem:[#allocation3] sm:$0xff] %v1764_v50  ;;  %1767 = vst [vmem:[#allocation3 + $0x8] sm:$0xff] %v1765_v38 }
 0x603   :  { %2028 = shalt.err (!%p2025_p4)
}
 0x604   :  { %s2029_s17 = scalar_lea.hbm %s2864_s9, 256 }
 0x605   :  { %p2030_p5 = scmp.ne.s32.totalorder %s2864_s9, %s2029_s17  ;;  %p2033_p6 = scmp.lt.u32.totalorder %s2029_s17, %s2864_s9 }
 0x607   :  { %p2035_p7 = pnand %p2033_p6, %p2030_p5 }
 0x609   :  { %2038 = shalt.err (!%p2035_p7)
}
 0x60a   :  { %1777 = dma.vmem_to_hbm [thread:$0]  %s1775_s10, 256, %s2864_s9, [#allocation4]  }
 0x60b   :  { %2039 = dma.done.wait [#allocation4], 256  }
 0x60c   :  { %2040 = vsyncadd [#allocation4], 4294967040 }
 0x60d   :  { %1781 = vsyncpa [#allocation4], 1 }

</bundles_post_ra>
